<compile_context>
chip_gen: v7x
topology: tpu7x:2x2x1
jax: 0.10.0
libtpu: 0.0.40
codegen_flags: <defaults>
</compile_context>

<pallas_src>
import functools

import jax
import jax.numpy as jnp
from jax.experimental import pallas as pl
from jax.experimental.pallas import tpu as pltpu

MARGIN = 2.0

_LANES = 128
_ACC_SUBLANES = 32          # accumulator slab (32,128) f32 = 4 vregs of ILP

# Row-tile candidates (rows per grid step), all multiples of 32 so f32 / bf16 /
# int8 blocks are tile-aligned.  Largest candidate kept at 4096 so the
# double-buffered footprint fits every generation's default scoped VMEM.
_TILE_CANDIDATES = (4096, 2048, 1024, 512, 256, 128, 64, 32)

# Split the stream across two core-slices early: essential to reach chip HBM
# roofline on v7x (2 TensorCores); near-free (<1%) on single-TC v5e/v6e.
_MIN_ROWS_FOR_TWO_SLICES = 2048


def _pick_tile(rows):
    """Largest row tile that either divides `rows` or wastes <= rows/8 of padding."""
    for t in _TILE_CANDIDATES:
        if rows % t == 0 or rows >= 8 * t:
            return t
    return _TILE_CANDIDATES[-1]


def _contrastive_loss_kernel(d_ref, l_ref, acc_ref, *, margin, binary_labels):
    """One (tile, 128) block: accumulate per-element loss into a (32,128) slab."""
    j = pl.program_id(1)  # chunk index along the "arbitrary" reduction axis

    @pl.when(j == 0)
    def _():
        acc_ref[...] = jnp.zeros_like(acc_ref)

    d = d_ref[...].astype(jnp.float32)                       # (tile, 128)
    hinge = jnp.maximum(jnp.float32(margin) - d, 0.0)

    lab = l_ref[...].astype(jnp.float32)
    if binary_labels:
        # Hard 0/1 labels -> select; roughly half the VALU work of the blend.
        t = jnp.where(lab != 0.0, hinge, d)
        per_elem = t * t
    else:
        # Soft / fractional labels: exact blended form from the reference.
        per_elem = (1.0 - lab) * (d * d) + lab * (hinge * hinge)

    # Fold the row tile into a (32,128) slab with pure VPU adds (contiguous,
    # tile-aligned reshape; 4 independent vreg columns give the scheduler ILP,
    # so the chain stays hidden under the per-step DMA).  The expensive
    # cross-lane reduction is deferred to the wrapper (runs once).
    acc_ref[...] += per_elem.reshape(-1, _ACC_SUBLANES, _LANES).sum(axis=0)


def contrastive_loss(distance, label, margin=MARGIN):
    """Pallas TPU ContrastiveLoss.  `distance`/`label` may have any (equal) shape.

    Integer / bool labels are treated as hard 0/1 labels (int8 recommended:
    1 byte/elem HBM traffic).  Float labels (f32 / bf16) take the exact
    soft-label blended path.  `distance` may be f32 or bf16 (accumulation is
    always f32).
    """
    assert distance.shape == label.shape, "distance/label shapes must match"
    total_n = distance.size
    assert total_n > 0

    if label.dtype == jnp.bool_:
        label = label.astype(jnp.int8)
    binary_labels = bool(jnp.issubdtype(label.dtype, jnp.integer))

    d_flat = distance.reshape(-1)
    l_flat = label.reshape(-1)

    # Lay the stream out as [num_slices, rows, 128].  Pad with zero rows
    # (distance=0, label=0 contributes exactly 0) so the chosen tile always
    # divides, and divide by the TRUE element count below.
    rows_total = -(-total_n // _LANES)
    num_slices = 2 if rows_total >= _MIN_ROWS_FOR_TWO_SLICES else 1
    rows_nominal = -(-rows_total // num_slices)
    tile = _pick_tile(rows_nominal)
    chunks = -(-rows_nominal // tile)
    rows = chunks * tile
    padded_n = num_slices * rows * _LANES
    if padded_n != total_n:
        pad = padded_n - total_n
        d_flat = jnp.pad(d_flat, (0, pad))
        l_flat = jnp.pad(l_flat, (0, pad))

    d3 = d_flat.reshape(num_slices, rows, _LANES)
    l3 = l_flat.reshape(num_slices, rows, _LANES)

    kernel = functools.partial(
        _contrastive_loss_kernel,
        margin=float(margin),
        binary_labels=binary_labels,
    )

    partials = pl.pallas_call(
        kernel,
        out_shape=jax.ShapeDtypeStruct(
            (num_slices, _ACC_SUBLANES, _LANES), jnp.float32
        ),
        grid_spec=pltpu.PrefetchScalarGridSpec(
            num_scalar_prefetch=0,
            grid=(num_slices, chunks),
            in_specs=[
                pl.BlockSpec((None, tile, _LANES), lambda c, j: (c, j, 0)),
                pl.BlockSpec((None, tile, _LANES), lambda c, j: (c, j, 0)),
            ],
            # Output slab is revisited across the chunk axis -> VMEM-resident
            # accumulator; one slab per core-slice so "parallel" never races.
            out_specs=pl.BlockSpec(
                (None, _ACC_SUBLANES, _LANES), lambda c, j: (c, 0, 0)
            ),
        ),
        compiler_params=pltpu.CompilerParams(
            dimension_semantics=("parallel", "arbitrary"),
        ),
    )(d3, l3)

    # Single tiny cross-lane reduction + mean, done once outside the kernel.
    return jnp.sum(partials) / jnp.float32(total_n)


def _reference(distance, label, margin=MARGIN):
    d = distance.astype(jnp.float32)
    lab = label.astype(jnp.float32)
    return jnp.mean(
        (1.0 - lab) * d**2 + lab * jnp.maximum(margin - d, 0.0) ** 2
    )


if __name__ == "__main__":
    key = jax.random.PRNGKey(0)
    k1, k2, k3 = jax.random.split(key, 3)

    # Pairwise distances are non-negative; hard labels are 0/1 (int8 fast path).
    R, C = 16, 128  # 2048 pairs total (small smoke-test shape)
    distance = jnp.abs(jax.random.normal(k1, (R, C), dtype=jnp.float32)) * 1.5
    label_hard = jax.random.bernoulli(k2, 0.5, (R, C)).astype(jnp.int8)

    loss = jax.block_until_ready(contrastive_loss(distance, label_hard))
    ref = _reference(distance, label_hard)
    assert jnp.allclose(loss, ref, rtol=1e-5, atol=1e-6), (loss, ref)

    # Soft (float) labels exercise the exact blended path of the reference.
    label_soft = jax.random.uniform(k3, (R, C), dtype=jnp.float32)
    loss_s = jax.block_until_ready(contrastive_loss(distance, label_soft))
    ref_s = _reference(distance, label_soft)
    assert jnp.allclose(loss_s, ref_s, rtol=1e-5, atol=1e-6), (loss_s, ref_s)

    print("KERNEL_OK")
</pallas_src>

<mosaic_0001>
module attributes {stable_mosaic.version = 11 : i64} {
  func.func @_contrastive_loss_kernel(%arg0: i32, %arg1: i32, %arg2: memref<1x32x128xf32, #tpu.memory_space<vmem>>, %arg3: memref<1x32x128xi8, #tpu.memory_space<vmem>>, %arg4: memref<1x32x128xf32, #tpu.memory_space<vmem>>) attributes {dimension_semantics = [#tpu.dimension_semantics<parallel>, #tpu.dimension_semantics<arbitrary>], iteration_bounds = array<i64: 1, 1>, scalar_prefetch = 0 : i64, scratch_operands = 0 : i64, tpu.core_type = #tpu.core_type<tc>, window_params = [{transform_indices = @transform_0, window_bounds = array<i64: 1, 32, 128>}, {transform_indices = @transform_1, window_bounds = array<i64: 1, 32, 128>}, {transform_indices = @transform_2, window_bounds = array<i64: 1, 32, 128>}]} {
    %c0_i32 = arith.constant 0 : i32
    %0 = arith.cmpi eq, %arg1, %c0_i32 : i32
    %1 = arith.extui %0 : i1 to i32
    %c0_i32_0 = arith.constant 0 : i32
    %2 = arith.cmpi ne, %1, %c0_i32_0 : i32
    scf.if %2 {
      %cst_15 = arith.constant 0.000000e+00 : f32
      %24 = vector.broadcast %cst_15 : f32 to vector<32x128xf32>
      %c0_16 = arith.constant 0 : index
      %c0_17 = arith.constant 0 : index
      %c0_18 = arith.constant 0 : index
      %25 = vector.load %arg4[%c0_16, %c0_17, %c0_18] : memref<1x32x128xf32, #tpu.memory_space<vmem>>, vector<1x32x128xf32>
      %26 = vector.shape_cast %25 : vector<1x32x128xf32> to vector<32x128xf32>
      %27 = vector.shape_cast %24 : vector<32x128xf32> to vector<1x32x128xf32>
      tpu.vector_store %arg4[%c0_16, %c0_17, %c0_18], %27 {strides = array<i32>} : memref<1x32x128xf32, #tpu.memory_space<vmem>>, vector<1x32x128xf32>,
    } else {
    }
    %c0 = arith.constant 0 : index
    %c0_1 = arith.constant 0 : index
    %c0_2 = arith.constant 0 : index
    %3 = vector.load %arg2[%c0, %c0_1, %c0_2] : memref<1x32x128xf32, #tpu.memory_space<vmem>>, vector<1x32x128xf32>
    %4 = vector.shape_cast %3 : vector<1x32x128xf32> to vector<32x128xf32>
    %cst = arith.constant 2.000000e+00 : f32
    %5 = vector.broadcast %cst : f32 to vector<32x128xf32>
    %6 = arith.subf %5, %4 : vector<32x128xf32>
    %cst_3 = arith.constant 0.000000e+00 : f32
    %7 = vector.broadcast %cst_3 : f32 to vector<32x128xf32>
    %8 = arith.maximumf %6, %7 : vector<32x128xf32>
    %c0_4 = arith.constant 0 : index
    %c0_5 = arith.constant 0 : index
    %c0_6 = arith.constant 0 : index
    %9 = vector.load %arg3[%c0_4, %c0_5, %c0_6] : memref<1x32x128xi8, #tpu.memory_space<vmem>>, vector<1x32x128xi8>
    %10 = vector.shape_cast %9 : vector<1x32x128xi8> to vector<32x128xi8>
    %11 = arith.sitofp %10 : vector<32x128xi8> to vector<32x128xf32>
    %cst_7 = arith.constant 0.000000e+00 : f32
    %12 = vector.broadcast %cst_7 : f32 to vector<32x128xf32>
    %13 = arith.cmpf one, %11, %12 : vector<32x128xf32>
    %14 = arith.select %13, %8, %4 : vector<32x128xi1>, vector<32x128xf32>
    %15 = arith.mulf %14, %14 : vector<32x128xf32>
    %c0_8 = arith.constant 0 : index
    %c0_9 = arith.constant 0 : index
    %c0_10 = arith.constant 0 : index
    %16 = vector.load %arg4[%c0_8, %c0_9, %c0_10] : memref<1x32x128xf32, #tpu.memory_space<vmem>>, vector<1x32x128xf32>
    %17 = vector.shape_cast %16 : vector<1x32x128xf32> to vector<32x128xf32>
    %18 = vector.shape_cast %15 : vector<32x128xf32> to vector<1x32x128xf32>
    %cst_11 = arith.constant dense<0.000000e+00> : vector<32x128xf32>
    %19 = vector.multi_reduction <add>, %18, %cst_11 [0] : vector<1x32x128xf32> to vector<32x128xf32>
    %20 = arith.addf %17, %19 : vector<32x128xf32>
    %c0_12 = arith.constant 0 : index
    %c0_13 = arith.constant 0 : index
    %c0_14 = arith.constant 0 : index
    %21 = vector.load %arg4[%c0_12, %c0_13, %c0_14] : memref<1x32x128xf32, #tpu.memory_space<vmem>>, vector<1x32x128xf32>
    %22 = vector.shape_cast %21 : vector<1x32x128xf32> to vector<32x128xf32>
    %23 = vector.shape_cast %20 : vector<32x128xf32> to vector<1x32x128xf32>
    tpu.vector_store %arg4[%c0_12, %c0_13, %c0_14], %23 {strides = array<i32>} : memref<1x32x128xf32, #tpu.memory_space<vmem>>, vector<1x32x128xf32>,
    return
  }
  func.func @transform_0(%arg0: i32, %arg1: i32) -> (i32, i32, i32) {
    %c0_i32 = arith.constant 0 : i32
    %c0_i32_0 = arith.constant 0 : i32
    return %arg0, %arg1, %c0_i32 : i32, i32, i32
  }
  func.func @transform_1(%arg0: i32, %arg1: i32) -> (i32, i32, i32) {
    %c0_i32 = arith.constant 0 : i32
    %c0_i32_0 = arith.constant 0 : i32
    return %arg0, %arg1, %c0_i32 : i32, i32, i32
  }
  func.func @transform_2(%arg0: i32, %arg1: i32) -> (i32, i32, i32) {
    %c0_i32 = arith.constant 0 : i32
    %c0_i32_0 = arith.constant 0 : i32
    %c0_i32_1 = arith.constant 0 : i32
    return %arg0, %c0_i32, %c0_i32_0 : i32, i32, i32
  }
}

</mosaic_0001>

<bundles_post_ra>
// kernel: tpu_custom_call.1
= control target key start
LH: loop header
LB: loop body
LE: loop exit
PB: predicated region body
PF: predicated region fallthrough
CT: control target
= control target key end

     0   :  { %7 = vsyncpa [#allocation3], 0  ;;  %s253_s0 = inlined_call_operand.hbm [shape: f32[1,32,128], index: 0, kind: input, shape index: {}]   ;;  %s254_s1 = inlined_call_operand.hbm [shape: s8[1,32,128], index: 1, kind: input, shape index: {}]   ;;  %s255_s2 = inlined_call_operand.hbm [shape: f32[1,32,128], index: 2, kind: output, shape index: {}]  }
   0x1   :  { %8 = vsyncpa [#allocation6], 0 }
   0x2   :  { %9 = vsyncpa [#allocation4], 0  ;;  %s191_s9 = smov [#allocation2]   ;;  %s119_s13 = scalar_lea.hbm %s253_s0, 512 }
   0x3   :  { %s15_s10 = sshll.u32 %s191_s9, 4  ;;  %p120_p0 = scmp.ne.s32.totalorder %s253_s0, %s119_s13  ;;  %s16_s10 = int_to_ptr.vmem [resolvable:$true] %s15_s10 }
   0x4   :  { %p123_p1 = scmp.lt.u32.totalorder %s119_s13, %s253_s0 }
   0x6   :  { %p125_p2 = pnand %p123_p1, %p120_p0 }
   0x8   :  { %128 = shalt.err (!%p125_p2)
}
   0x9   :  { %s129_s18 = scalar_lea.vmem %s16_s10, 512  ;;  %p134_p4 = scmp.lt.s32.totalorder %s16_s10, %s16_s10 }
   0xa   :  { %p130_p3 = scmp.ne.s32.totalorder %s16_s10, %s129_s18  ;;  %p135_p5 = scmp.lt.s32.totalorder %s129_s18, %s129_s18 }
   0xc   :  { %p136_p6 = por %p135_p5, %p134_p4 }
   0xe   :  { %p137_p7 = pnand %p136_p6, %p130_p3 }
  0x10   :  { %140 = shalt.err (!%p137_p7)
}
  0x11   :  { %s192_s19 = smov 128   ;;  %s193_s20 = smov 8  }
  0x12   :  { %21 = dma.hbm_to_vmem [thread:$0]  %s253_s0, 512, %s16_s10, [#allocation3], %s192_s19, %s192_s19, %s193_s20  }
  0x13   :  { %s194_s23 = smov [#allocation5]   ;;  %s141_s27 = scalar_lea.hbm %s254_s1, 128 }
  0x14   :  { %s28_s24 = sshll.u32 %s194_s23, 4  ;;  %p142_p8 = scmp.ne.s32.totalorder %s254_s1, %s141_s27  ;;  %s29_s24 = int_to_ptr.vmem [resolvable:$true] %s28_s24 }
  0x15   :  { %p145_p9 = scmp.lt.u32.totalorder %s141_s27, %s254_s1 }
  0x17   :  { %p147_p10 = pnand %p145_p9, %p142_p8 }
  0x19   :  { %150 = shalt.err (!%p147_p10)
}
  0x1a   :  { %s151_s4 = scalar_lea.vmem %s29_s24, 128  ;;  %p156_p12 = scmp.lt.s32.totalorder %s29_s24, %s29_s24 }
  0x1b   :  { %p152_p11 = scmp.ne.s32.totalorder %s29_s24, %s151_s4  ;;  %p157_p13 = scmp.lt.s32.totalorder %s151_s4, %s151_s4 }
  0x1d   :  { %p158_p0 = por %p157_p13, %p156_p12 }
  0x1f   :  { %p159_p1 = pnand %p158_p0, %p152_p11 }
  0x21   :  { %162 = shalt.err (!%p159_p1)
}
  0x22   :  { %31 = dma.hbm_to_vmem [thread:$0]  %s254_s1, 128, %s29_s24, [#allocation6]  }
  0x23   :  { %185 = dma.done.wait [#allocation3], 512  }
  0x24   :  { %186 = vsyncadd [#allocation3], 4294966784 }
  0x25   :  { %187 = dma.done.wait [#allocation6], 128  }
  0x26   :  { %188 = vsyncadd [#allocation6], 4294967168  ;;  %v46_v0 = vld [vmem:[#allocation2] sm:$0xff]  ;;  %v47_v2 = vld [vmem:[#allocation2 + $0x8] sm:$0xff]  ;;  %s195_s1 = smov [#allocation7]  }
  0x27   :  { %v58_v1 = vld [vmem:[#allocation5] sm:$0xff]  ;;  %v50_v3 = vsub.f32 2.0, %v46_v0  ;;  %v51_v5 = vsub.f32 2.0, %v47_v2  ;;  %v48_v7 = vld [vmem:[#allocation2 + $0x10] sm:$0xff]  ;;  %v49_v8 = vld [vmem:[#allocation2 + $0x18] sm:$0xff]  ;;  %s100_s6 = sshll.u32 %s195_s1, 4  ;;  %s101_s6 = int_to_ptr.vmem [resolvable:$true] %s100_s6 }
  0x28   :  { %v59_v4 = vunpack.c.0.s8 %v58_v1  ;;  %v60_v6 = vunpack.c.1.s8 %v58_v1  ;;  %v52_v9 = vsub.f32 2.0, %v48_v7  ;;  %v61_v10 = vunpack.c.2.s8 %v58_v1  ;;  %s163_s7 = scalar_lea.vmem %s101_s6, 512  ;;  %p168_p3 = scmp.lt.s32.totalorder %s101_s6, %s101_s6 }
  0x29   :  { %v53_v11 = vsub.f32 2.0, %v49_v8  ;;  %v62_v12 = vunpack.c.3.s8 %v58_v1  ;;  %v54_v13 = vmax.f32 %v50_v3, 0.0  ;;  %v55_v15 = vmax.f32 %v51_v5, 0.0  ;;  %p164_p2 = scmp.ne.s32.totalorder %s101_s6, %s163_s7  ;;  %p169_p4 = scmp.lt.s32.totalorder %s163_s7, %s163_s7 }
  0x2a   :  { %v63_v14 = vcvt.s32.f32 %v59_v4  ;;  %v64_v16 = vcvt.s32.f32 %v60_v6  ;;  %v56_v17 = vmax.f32 %v52_v9, 0.0  ;;  %v65_v18 = vcvt.s32.f32 %v61_v10 }
  0x2b   :  { %v57_v19 = vmax.f32 %v53_v11, 0.0  ;;  %v66_v20 = vcvt.s32.f32 %v62_v12  ;;  %p170_p5 = por %p169_p4, %p168_p3 }
  0x2c   :  { %vm67_vm0 = vcmp.ne.f32.partialorder %v63_v14, 0.0  ;;  %vm68_vm1 = vcmp.ne.f32.partialorder %v64_v16, 0.0  ;;  %vm69_vm2 = vcmp.ne.f32.partialorder %v65_v18, 0.0 }
  0x2d   :  { %v71_v21 = vsel %vm67_vm0, %v54_v13, %v46_v0  ;;  %v72_v22 = vsel %vm68_vm1, %v55_v15, %v47_v2  ;;  %vm70_vm3 = vcmp.ne.f32.partialorder %v66_v20, 0.0  ;;  %v73_v25 = vsel %vm69_vm2, %v56_v17, %v48_v7  ;;  %p171_p6 = pnand %p170_p5, %p164_p2 }
  0x2e   :  { %v75_v23 = vmul.f32 %v71_v21, %v71_v21  ;;  %v76_v24 = vmul.f32 %v72_v22, %v72_v22  ;;  %v74_v26 = vsel %vm70_vm3, %v57_v19, %v49_v8  ;;  %v77_v27 = vmul.f32 %v73_v25, %v73_v25 }
  0x2f   :  { %v78_v28 = vmul.f32 %v74_v26, %v74_v26 }
  0x30   :  { %91 = vst [vmem:[#allocation7] sm:$0xff] %v75_v23  ;;  %92 = vst [vmem:[#allocation7 + $0x8] sm:$0xff] %v76_v24 }
  0x31   :  { %93 = vst [vmem:[#allocation7 + $0x10] sm:$0xff] %v77_v27  ;;  %94 = vst [vmem:[#allocation7 + $0x18] sm:$0xff] %v78_v28 }
  0x32   :  { %174 = shalt.err (!%p171_p6)
}
  0x33   :  { %s175_s10 = scalar_lea.hbm %s255_s2, 512 }
  0x34   :  { %p176_p7 = scmp.ne.s32.totalorder %s255_s2, %s175_s10  ;;  %p179_p8 = scmp.lt.u32.totalorder %s175_s10, %s255_s2 }
  0x36   :  { %p181_p9 = pnand %p179_p8, %p176_p7 }
  0x38   :  { %184 = shalt.err (!%p181_p9)
}
  0x39   :  { %106 = dma.vmem_to_hbm [thread:$0]  %s101_s6, 512, %s255_s2, [#allocation4], %s192_s19, %s192_s19, %s193_s20  }
  0x3a   :  { %189 = dma.done.wait [#allocation4], 512  }
  0x3b   :  { %190 = vsyncadd [#allocation4], 4294966784 }
  0x3c   :  { %110 = vsyncpa [#allocation3], 1 }
  0x3d   :  { %111 = vsyncpa [#allocation6], 1 }
  0x3e   :  { %112 = vsyncpa [#allocation4], 1 }

</bundles_post_ra>
